<compile_context>
chip_gen: v7x
topology: tpu7x:2x2x1
jax: 0.10.0
libtpu: 0.0.40
codegen_flags: <defaults>
</compile_context>

<pallas_src>
import functools

import jax
import jax.numpy as jnp
from jax.experimental import pallas as pl
from jax.experimental.pallas import tpu as pltpu


# ---------------------------------------------------------------------------
# Fast path: plane-batched, fully auto-pipelined.
# Read (bp, H, W) blocks (contiguous rows), crop in VMEM, write (bp, Hc, Wc).
# ---------------------------------------------------------------------------
def _crop_block_kernel(x_ref, o_ref, *, crop, crop_h, crop_w):
    o_ref[...] = x_ref[:, pl.ds(crop, crop_h), pl.ds(crop, crop_w)]


# ---------------------------------------------------------------------------
# Fallback for very large planes: grid = (planes, h_slabs).  Each step moves
# one contiguous row-slab per plane via manual DMA and crops W in VMEM.
# The last slab's start is clamped (overlap rewrites identical values), so no
# dynamic copy sizes and no out-of-bounds DMA are ever issued.
# ---------------------------------------------------------------------------
def _crop_slab_kernel(x_hbm, o_hbm, in_buf, out_buf, in_sem, out_sem, *,
                      crop, crop_h, crop_w, tile_h):
    p = pl.program_id(0)
    j = pl.program_id(1)
    h0 = jnp.minimum(j * tile_h, crop_h - tile_h)

    cp_in = pltpu.make_async_copy(
        x_hbm.at[p, pl.ds(crop + h0, tile_h), :], in_buf, in_sem)
    cp_in.start()
    cp_in.wait()

    out_buf[...] = in_buf[:, pl.ds(crop, crop_w)]

    cp_out = pltpu.make_async_copy(
        out_buf, o_hbm.at[p, pl.ds(h0, tile_h), :], out_sem)
    cp_out.start()
    cp_out.wait()


def _round_up(x: int, m: int) -> int:
    return (x + m - 1) // m * m


def _vmem_capacity_bytes() -> int:
    try:
        return int(pltpu.get_tpu_info().vmem_capacity_bytes)
    except Exception:
        return 64 * 1024 * 1024  # v7x per-TC floor; safe on every generation


def _pick_block_planes(planes: int, per_plane_vmem: int, per_plane_real: int,
                       vmem_budget: int,
                       target_real_bytes: int = 4 * 1024 * 1024) -> int:
    """Largest plane batch that fits the double-buffered VMEM budget, keeps
    >= 2 grid steps (v7x megacore), and isn't larger than needed to move
    ~target_real_bytes of real (cropped) data per grid step."""
    bp = min(planes, max(1, vmem_budget // per_plane_vmem))
    if planes >= 2:
        bp = min(bp, -(-planes // 2))                      # >= 2 grid steps
    bp = min(bp, max(1, -(-target_real_bytes // per_plane_real)))
    return max(1, bp)


def crop(x: jnp.ndarray, crop_size: int) -> jnp.ndarray:
    """Crops `crop_size` pixels from each side of the last two dims of x."""
    c = int(crop_size)
    *lead, H, W = x.shape
    Hc, Wc = H - 2 * c, W - 2 * c
    assert Hc > 0 and Wc > 0, "crop_size too large for input spatial dims"
    if c == 0:
        return x

    planes = 1
    for d in lead:
        planes *= int(d)
    planes = max(planes, 1)
    xf = x.reshape(planes, H, W)                 # metadata-only reshape

    itemsize = jnp.dtype(x.dtype).itemsize
    sublane = 8 * max(1, 4 // itemsize)          # packed-sublane granularity

    vmem_cap = _vmem_capacity_bytes()
    vmem_limit = min(vmem_cap // 2, 96 * 1024 * 1024)   # 32 MiB v7x, 64 MiB v5e/v6e
    vmem_budget = (vmem_limit * 3) // 4                 # headroom for Mosaic scratch

    pad_in = _round_up(H, sublane) * _round_up(W, 128) * itemsize
    pad_out = _round_up(Hc, sublane) * _round_up(Wc, 128) * itemsize
    per_plane_vmem = 2 * (pad_in + pad_out)      # double-buffered in + out blocks
    per_plane_real = Hc * Wc * itemsize

    bytes_accessed = planes * (H * W + Hc * Wc) * itemsize

    if per_plane_vmem <= vmem_budget:
        # ---- Fast path: auto-pipelined full-window read, crop in VMEM. ----
        bp = _pick_block_planes(planes, per_plane_vmem, per_plane_real,
                                vmem_budget)
        grid = pl.cdiv(planes, bp)
        kernel = functools.partial(_crop_block_kernel,
                                   crop=c, crop_h=Hc, crop_w=Wc)
        out = pl.pallas_call(
            kernel,
            out_shape=jax.ShapeDtypeStruct((planes, Hc, Wc), x.dtype),
            grid_spec=pltpu.PrefetchScalarGridSpec(
                num_scalar_prefetch=0,
                grid=(grid,),
                in_specs=[pl.BlockSpec((bp, H, W), lambda i: (i, 0, 0))],
                out_specs=pl.BlockSpec((bp, Hc, Wc), lambda i: (i, 0, 0)),
            ),
            compiler_params=pltpu.CompilerParams(
                dimension_semantics=("parallel",),
                vmem_limit_bytes=vmem_limit,
            ),
            cost_estimate=pl.CostEstimate(
                flops=0, transcendentals=0, bytes_accessed=bytes_accessed),
        )(xf)
    else:
        # ---- Large-plane fallback: H-slab tiling with manual contiguous DMAs.
        row_bytes = (_round_up(W, 128) + _round_up(Wc, 128)) * itemsize
        tile_h = max(8, (vmem_budget // max(row_bytes, 1)) // 8 * 8)
        tile_h = min(tile_h, Hc)
        grid = (planes, pl.cdiv(Hc, tile_h))
        kernel = functools.partial(_crop_slab_kernel,
                                   crop=c, crop_h=Hc, crop_w=Wc, tile_h=tile_h)
        out = pl.pallas_call(
            kernel,
            out_shape=jax.ShapeDtypeStruct((planes, Hc, Wc), x.dtype),
            grid_spec=pltpu.PrefetchScalarGridSpec(
                num_scalar_prefetch=0,
                grid=grid,
                in_specs=[pl.BlockSpec(memory_space=pl.ANY)],
                out_specs=pl.BlockSpec(memory_space=pl.ANY),
                scratch_shapes=[
                    pltpu.VMEM((tile_h, W), x.dtype),
                    pltpu.VMEM((tile_h, Wc), x.dtype),
                    pltpu.SemaphoreType.DMA(()),
                    pltpu.SemaphoreType.DMA(()),
                ],
            ),
            compiler_params=pltpu.CompilerParams(
                dimension_semantics=("parallel", "arbitrary"),
                vmem_limit_bytes=vmem_limit,
            ),
            cost_estimate=pl.CostEstimate(
                flops=0, transcendentals=0,
                bytes_accessed=planes * (Hc * W + Hc * Wc) * itemsize),
        )(xf)

    return out.reshape(*lead, Hc, Wc)


if __name__ == "__main__":
    key = jax.random.PRNGKey(0)
    N, C, H, W = 2, 4, 16, 16
    crop_size = 2

    x = jax.random.normal(key, (N, C, H, W), dtype=jnp.float32)

    out = crop(x, crop_size)
    out = jax.block_until_ready(out)

    # Reference (plain JAX slicing, mirrors the PyTorch forward exactly).
    ref = x[..., crop_size:H - crop_size, crop_size:W - crop_size]

    assert out.shape == (N, C, H - 2 * crop_size, W - 2 * crop_size), out.shape
    assert out.dtype == x.dtype
    assert jnp.array_equal(out, ref), "mismatch vs reference crop"

    print("KERNEL_OK")
</pallas_src>

<mosaic_0001>
module attributes {stable_mosaic.version = 11 : i64} {
  func.func @_crop_block_kernel(%arg0: i32, %arg1: memref<4x16x16xf32, #tpu.memory_space<vmem>>, %arg2: memref<4x12x12xf32, #tpu.memory_space<vmem>>) attributes {dimension_semantics = [#tpu.dimension_semantics<parallel>], iteration_bounds = array<i64: 2>, scalar_prefetch = 0 : i64, scratch_operands = 0 : i64, tpu.core_type = #tpu.core_type<tc>, window_params = [{transform_indices = @transform_0, window_bounds = array<i64: 4, 16, 16>}, {transform_indices = @transform_1, window_bounds = array<i64: 4, 12, 12>}]} {
    %c0 = arith.constant 0 : index
    %c2 = arith.constant 2 : index
    %c2_0 = arith.constant 2 : index
    %0 = vector.load %arg1[%c0, %c2, %c2_0] : memref<4x16x16xf32, #tpu.memory_space<vmem>>, vector<4x12x12xf32>
    %c0_1 = arith.constant 0 : index
    %c0_2 = arith.constant 0 : index
    %c0_3 = arith.constant 0 : index
    %1 = vector.load %arg2[%c0_1, %c0_2, %c0_3] : memref<4x12x12xf32, #tpu.memory_space<vmem>>, vector<4x12x12xf32>
    tpu.vector_store %arg2[%c0_1, %c0_2, %c0_3], %0 {strides = array<i32>} : memref<4x12x12xf32, #tpu.memory_space<vmem>>, vector<4x12x12xf32>,
    return
  }
  func.func @transform_0(%arg0: i32) -> (i32, i32, i32) {
    %c0_i32 = arith.constant 0 : i32
    %c0_i32_0 = arith.constant 0 : i32
    %c0_i32_1 = arith.constant 0 : i32
    return %arg0, %c0_i32, %c0_i32_0 : i32, i32, i32
  }
  func.func @transform_1(%arg0: i32) -> (i32, i32, i32) {
    %c0_i32 = arith.constant 0 : i32
    %c0_i32_0 = arith.constant 0 : i32
    %c0_i32_1 = arith.constant 0 : i32
    return %arg0, %c0_i32, %c0_i32_0 : i32, i32, i32
  }
}

</mosaic_0001>

<bundles_post_ra>
// kernel: tpu_custom_call.1
= control target key start
LH: loop header
LB: loop body
LE: loop exit
PB: predicated region body
PF: predicated region fallthrough
CT: control target
= control target key end

     0   :  { %6 = vsyncpa [#allocation3], 0  ;;  %s512_s0 = inlined_call_operand.hbm [shape: f32[8,16,16], index: 0, kind: input, shape index: {}]   ;;  %s513_s1 = inlined_call_operand.vmem [shape: f32[8,12,12], index: 1, kind: output, shape index: {}]  }
   0x1   :  { %8 = vsyncpa [#allocation3 + $0x1], 0  ;;  %s401_s6 = smov 0   ;;  %s403_s7 = smov 0  }
   0x2   :  { %s405_s8 = smov 0   ;;  %s407_s9 = smov 0  }
   0x3 LB: > { %s261_s10 = sadd.s32 4294967295, %s385_s9   ;;  %s421_s11 = sadd.s32 1, %s385_s9   ;;  %s385_s9 = sphi %s407_s9, %s520_s9   ;;  %s381_s8 = sphi %s405_s8, %s519_s8   ;;  %s377_s7 = sphi %s403_s7, %s518_s7   ;;  %s373_s6 = sphi %s401_s6, %s517_s6  }
   0x4   : > { %s18_s12 = ssub.s32 %s385_s9, %s421_s11  ;;  %s21_s13 = sadd.s32 1, %s381_s8 }
   0x5   : > { %p19_p0 = scmp.eq.s32.totalorder %s18_s12, 0  ;;  %p28_p1 = scmp.ne.s32.totalorder %s381_s8, %s377_s7 }
   0x6   : > { %p29_p2 = scmp.eq.s32.totalorder %s385_s9, 0  ;;  %p34_p3 = scmp.ne.s32.totalorder %s377_s7, %s373_s6 }
   0x7   : > { %s431_s14 = scalar_select %p19_p0, %s381_s8, %s21_s13  }
   0x8   : > { %p30_p4 = por %p29_p2, %p28_p1  ;;  %p35_p5 = scmp.eq.s32.totalorder %s261_s10, 0 }
   0x9   : > { %p285_p6 = scmp.lt.s32.totalorder %s385_s9, 2  ;;  %s84_s16 = sand.u32 1, %s381_s8  }
   0xa   : > { %p436_p7 = por %p35_p5, %p34_p3  ;;  %s265_s17 = sshll.u32 %s84_s16, 6 }
   0xb   : > { %s277_s18 = sshll.u32 %s385_s9, 10  ;;  %s88_s22 = scalar_lea.vmem [#allocation2], %s265_s17 }
   0xc   : > { %s445_s21 = scalar_lea.hbm %s512_s0, %s277_s18  ;;  %s96_s23 = sshll.u32 %s88_s22, 4  ;;  %s447_s23 = int_to_ptr.vmem [resolvable:$true] %s96_s23 }
   0xd   : > { %p449_p8 = pnand %p285_p6, %p30_p4  ;;  %s454_s25 = scalar_lea.sflag [#allocation3], %s84_s16 }
   0xe   : > { %s321_s26 = scalar_lea.hbm %s445_s21, 1024  ;;  %s326_s29 = scalar_lea.hbm %s512_s0, 2048 }
   0xf   : > { %p322_p10 = scmp.ne.s32.totalorder %s445_s21, %s321_s26  ;;  %p323_p11 = pneg %p449_p8 }
  0x10   : > { %p327_p0 = scmp.lt.u32.totalorder %s445_s21, %s512_s0  ;;  %p328_p1 = scmp.lt.u32.totalorder %s326_s29, %s321_s26 }
  0x11   : > { %p324_p12 = pnand %p323_p11, %p322_p10  ;;  %p330_p3 = scmp.lt.u32.totalorder %s321_s26, %s445_s21 }
  0x12   : > { %p329_p2 = por %p328_p1, %p327_p0 }
  0x13   : > { %p325_p13 = pneg %p324_p12 }
  0x14   : > { %p331_p4 = por %p330_p3, %p329_p2 }
  0x16   : > { %p332_p5 = pnand %p331_p4, %p325_p13 }
  0x18   : > { %335 = shalt.err (!%p332_p5)
}
  0x19   : > { %s336_s3 = scalar_lea.vmem %s447_s23, 1024  ;;  %s387_s4 = smov [#allocation2]  }
  0x1a   : > { %p337_p6 = scmp.ne.s32.totalorder %s447_s23, %s336_s3  ;;  %s341_s5 = sshll.u32 %s387_s4, 4  ;;  %s342_s5 = int_to_ptr.vmem [resolvable:$false] %s341_s5 }
  0x1b   : > { %s343_s6 = scalar_lea.vmem %s342_s5, 2048  ;;  %p344_p9 = scmp.lt.s32.totalorder %s447_s23, %s342_s5 }
  0x1c   : > { %p339_p10 = pnand %p337_p6, %p323_p11  ;;  %p345_p0 = scmp.lt.s32.totalorder %s343_s6, %s336_s3 }
  0x1e   : > { %p340_p12 = pneg %p339_p10  ;;  %p346_p1 = por %p345_p0, %p344_p9 }
  0x20   : > { %p347_p2 = pnand %p346_p1, %p340_p12 }
  0x22   : > { %350 = shalt.err (!%p347_p2)
}
  0x23   : > { %s388_s12 = smov 128   ;;  %s389_s13 = smov 8  }
  0x24   : > { %284 = dma.hbm_to_vmem [thread:$0]  (!%p449_p8), %s445_s21, 1024, %s447_s23, %s454_s25, %s388_s12, %s388_s12, %s389_s13  }
  0x25   : > { %p104_p11 = scmp.lt.s32.totalorder %s385_s9, 3  ;;  %p516_p13 = scmp.ge.s32.totalorder %s385_s9, 1 }
  0x27   : > { %p105_p3 = pnand %p516_p13, %p104_p11 }
  0x28   : > { %s110_s16 = sand.u32 (!%p105_p3), 1, %s377_s7  }
  0x29   : > { %108 = sbr.rel (%p105_p3) target bundleno = 179 (0xb3), region = 24  ;;  %s270_s17 = sshll.u32 (!%p105_p3), %s110_s16, 6 }
  0x2a   : > { %s111_s18 = scalar_lea.sflag (!%p105_p3), [#allocation3], %s110_s16  ;;  %s114_s19 = scalar_lea.vmem (!%p105_p3), [#allocation2], %s270_s17 }
  0x30   : > { %368 = dma.done.wait (%p436_p7), %s111_s18, 1024  }
  0x31   : > { %370 = vsyncadd (%p436_p7), %s111_s18, 4294966272  ;;  %v144_v0 = vld [vmem:[%s114_s19 + $0x12] sm:$0xff]  ;;  %v142_v1 = vld [vmem:[%s114_s19 + $0x2] sm:$0xff]  ;;  %s390_s20 = smov 126   ;;  %s271_s15 = sshll.u32 %s261_s10, 2  ;;  %vm182_vm0 = vcmask 97280  }
  0x32   : > { %162 = vrot.lane.b32.xlu1 %v144_v0, %s390_s20  ;;  %158 = vrot.lane.b32.xlu0 %v142_v1, %s390_s20  ;;  %v145_v2 = vld [vmem:[%s114_s19 + $0x1a] sm:$0xf]  ;;  %v143_v3 = vld [vmem:[%s114_s19 + $0xa] sm:$0xf]  ;;  %p136_p7 = scmp.lt.s32.totalorder %s271_s15, 7  ;;  %vm184_vm1 = vcmask 93184  }
  0x33   : > { %v147_v4 = vld [vmem:[%s114_s19 + $0x2a] sm:$0xf]  ;;  %v146_v5 = vld [vmem:[%s114_s19 + $0x22] sm:$0xff]  ;;  %v149_v6 = vld [vmem:[%s114_s19 + $0x3a] sm:$0xf] }
  0x34   : > { %v148_v7 = vld [vmem:[%s114_s19 + $0x32] sm:$0xff]  ;;  %s522_s15 = smov (!%p136_p7, %s271_s15), 7 }
  0x35   : > { %s278_s21 = sshll.u32 %s522_s15, 4 }
  0x36   : > { %164 = vrot.lane.b32.xlu1 %v145_v2, %s390_s20  ;;  %160 = vrot.lane.b32.xlu0 %v143_v3, %s390_s20  ;;  %s140_s24 = scalar_lea.vmem %s513_s1, %s278_s21 }
  0x3a   : > { %168 = vrot.lane.b32.xlu1 %v147_v4, %s390_s20  ;;  %166 = vrot.lane.b32.xlu0 %v146_v5, %s390_s20 }
  0x3e   : > { %172 = vrot.lane.b32.xlu1 %v149_v6, %s390_s20  ;;  %170 = vrot.lane.b32.xlu0 %v148_v7, %s390_s20 }
  0xa4   : > { %v163_v8 = vpop.permute.xlu1 %162  ;;  %v159_v9 = vpop.permute.xlu0 %158 }
  0xa5   : > { %183 = vst.msk [vmem:[%s140_s24] sm:$0xff] %vm182_vm0, %v159_v9  ;;  %186 = vst.msk [vmem:[%s140_s24 + $0x10] sm:$0xff] %vm182_vm0, %v163_v8 }
  0xa8   : > { %v165_v10 = vpop.permute.xlu1 %164  ;;  %v161_v11 = vpop.permute.xlu0 %160 }
  0xa9   : > { %185 = vst.msk [vmem:[%s140_s24 + $0x8] sm:$0xf] %vm184_vm1, %v161_v11  ;;  %187 = vst.msk [vmem:[%s140_s24 + $0x18] sm:$0xf] %vm184_vm1, %v165_v10 }
  0xac   : > { %v169_v12 = vpop.permute.xlu1 %168  ;;  %v167_v13 = vpop.permute.xlu0 %166 }
  0xad   : > { %189 = vst.msk [vmem:[%s140_s24 + $0x28] sm:$0xf] %vm184_vm1, %v169_v12 }
  0xae   : > { %188 = vst.msk [vmem:[%s140_s24 + $0x20] sm:$0xff] %vm182_vm0, %v167_v13 }
  0xb0   : > { %v173_v14 = vpop.permute.xlu1 %172  ;;  %v171_v15 = vpop.permute.xlu0 %170 }
  0xb1   : > { %191 = vst.msk [vmem:[%s140_s24 + $0x38] sm:$0xf] %vm184_vm1, %v173_v14 }
  0xb2   : > { %190 = vst.msk [vmem:[%s140_s24 + $0x30] sm:$0xff] %vm182_vm0, %v171_v15 }
  0xb3 PF: > { %p11_p8 = scmp.ge.s32.totalorder %s421_s11, 4   ;;  %s517_s6 = smov %s377_s7 }
  0xb4   : > { %s518_s7 = smov %s381_s8  ;;  %s519_s8 = smov %s431_s14 }
  0xb5   : > { %s520_s9 = smov %s421_s11  ;;  %13 = sbr.rel (!%p11_p8) target bundleno = 3 (0x3), region = 64 }
  0xbc   :  { %216 = vsyncpa [#allocation3], 1 }
  0xbd   :  { %218 = vsyncpa [#allocation3 + $0x1], 1 }

</bundles_post_ra>
